<compile_context>
chip_gen: v7x
topology: tpu7x:2x2x1
jax: 0.10.0
libtpu: 0.0.40
codegen_flags: <defaults>
</compile_context>

<pallas_src>
import functools

import jax
import jax.numpy as jnp
from jax.experimental import pallas as pl
from jax.experimental.pallas import tpu as pltpu


def _attn_orca_kernel(q_ref, k_ref, v_ref, o_ref, *, n_head, head_dim):
    # Block views: q/k/v are [1, S, H, hd]; o is [1, S, n_embd].
    q = q_ref[0]  # [S, H, hd]
    k = k_ref[0]
    v = v_ref[0]

    scale = 1.0 / float(head_dim)

    outs = []
    for h in range(n_head):  # static unroll: n_head is known at trace time
        qh = q[:, h, :] * scale  # [S, hd]  (scale folded into q, not [S,S] divide)
        kh = k[:, h, :]          # [S, hd]
        vh = v[:, h, :]          # [S, hd]

        # scores[s, t] = sum_d qh[s, d] * kh[t, d]  -- NT contraction, no k.T copy
        att = jax.lax.dot_general(
            qh, kh,
            dimension_numbers=(((1,), (1,)), ((), ())),
            preferred_element_type=jnp.float32,
        )  # [S, S]

        # Numerically-stable softmax over the last axis.
        m = jnp.max(att, axis=-1, keepdims=True)
        p = jnp.exp(att - m)
        denom = jnp.sum(p, axis=-1, keepdims=True)
        p = p * pl.reciprocal(denom, approx=True)

        yh = jnp.dot(p, vh, preferred_element_type=jnp.float32)  # [S, hd]
        outs.append(yh)

    # Single lane-dense [S, n_embd] store; head-major along the feature axis,
    # matching y.transpose(1, 2).reshape(B*S, n_embd) in the reference.
    o_ref[0] = jnp.concatenate(outs, axis=-1).astype(o_ref.dtype)


def attn_orca(q, k, v, n_head, n_embd, batch, seq):
    """q, k, v: [batch, seq, n_head, head_dim]. Returns [batch*seq, n_embd]."""
    head_dim = n_embd // n_head

    kernel = functools.partial(_attn_orca_kernel, n_head=n_head, head_dim=head_dim)

    qkv_spec = pl.BlockSpec((1, seq, n_head, head_dim), lambda b: (b, 0, 0, 0))

    out = pl.pallas_call(
        kernel,
        out_shape=jax.ShapeDtypeStruct((batch, seq, n_embd), q.dtype),
        grid_spec=pltpu.PrefetchScalarGridSpec(
            num_scalar_prefetch=0,
            grid=(batch,),
            in_specs=[qkv_spec, qkv_spec, qkv_spec],
            out_specs=pl.BlockSpec((1, seq, n_embd), lambda b: (b, 0, 0)),
        ),
        compiler_params=pltpu.CompilerParams(
            dimension_semantics=("parallel",),
        ),
    )(q, k, v)

    # Contiguous reshape only (no transpose / extra HBM traffic).
    return out.reshape(batch * seq, n_embd)


def _reference(q, k, v, n_head, n_embd, batch, seq):
    # Pure-JAX mirror of the PyTorch module, for sanity checking.
    head_dim = n_embd // n_head
    qt = jnp.transpose(q, (0, 2, 1, 3))
    kt = jnp.transpose(k, (0, 2, 1, 3))
    vt = jnp.transpose(v, (0, 2, 1, 3))
    att = jnp.einsum("bhqd,bhkd->bhqk", qt, kt) / head_dim
    att = jax.nn.softmax(att, axis=-1)
    y = jnp.einsum("bhqk,bhkd->bhqd", att, vt)
    return jnp.transpose(y, (0, 2, 1, 3)).reshape(batch * seq, n_embd)


if __name__ == "__main__":
    batch, seq, n_head, n_embd = 2, 8, 4, 32
    head_dim = n_embd // n_head

    key = jax.random.PRNGKey(0)
    kq, kk, kv = jax.random.split(key, 3)
    q = jax.random.normal(kq, (batch, seq, n_head, head_dim), dtype=jnp.float32)
    k = jax.random.normal(kk, (batch, seq, n_head, head_dim), dtype=jnp.float32)
    v = jax.random.normal(kv, (batch, seq, n_head, head_dim), dtype=jnp.float32)

    y = attn_orca(q, k, v, n_head, n_embd, batch, seq)
    y = jax.block_until_ready(y)

    y_ref = _reference(q, k, v, n_head, n_embd, batch, seq)
    assert y.shape == (batch * seq, n_embd)
    # approx reciprocal (EUP) in the softmax => tolerance ~1e-3 instead of 1e-5.
    assert jnp.allclose(y, y_ref, atol=2e-3, rtol=2e-3), float(
        jnp.max(jnp.abs(y - y_ref))
    )

    print("KERNEL_OK")
</pallas_src>

<mosaic_0001>
module attributes {stable_mosaic.version = 11 : i64} {
  func.func @_attn_orca_kernel(%arg0: i32, %arg1: memref<1x8x4x8xf32, #tpu.memory_space<vmem>>, %arg2: memref<1x8x4x8xf32, #tpu.memory_space<vmem>>, %arg3: memref<1x8x4x8xf32, #tpu.memory_space<vmem>>, %arg4: memref<1x8x32xf32, #tpu.memory_space<vmem>>) attributes {dimension_semantics = [#tpu.dimension_semantics<parallel>], iteration_bounds = array<i64: 2>, scalar_prefetch = 0 : i64, scratch_operands = 0 : i64, tpu.core_type = #tpu.core_type<tc>, window_params = [{transform_indices = @transform_0, window_bounds = array<i64: 1, 8, 4, 8>}, {transform_indices = @transform_1, window_bounds = array<i64: 1, 8, 4, 8>}, {transform_indices = @transform_2, window_bounds = array<i64: 1, 8, 4, 8>}, {transform_indices = @transform_3, window_bounds = array<i64: 1, 8, 32>}]} {
    %c0 = arith.constant 0 : index
    %c0_0 = arith.constant 0 : index
    %c0_1 = arith.constant 0 : index
    %c0_2 = arith.constant 0 : index
    %0 = vector.load %arg1[%c0, %c0_0, %c0_1, %c0_2] : memref<1x8x4x8xf32, #tpu.memory_space<vmem>>, vector<1x8x4x8xf32>
    %1 = vector.shape_cast %0 : vector<1x8x4x8xf32> to vector<8x4x8xf32>
    %c0_3 = arith.constant 0 : index
    %c0_4 = arith.constant 0 : index
    %c0_5 = arith.constant 0 : index
    %c0_6 = arith.constant 0 : index
    %2 = vector.load %arg2[%c0_3, %c0_4, %c0_5, %c0_6] : memref<1x8x4x8xf32, #tpu.memory_space<vmem>>, vector<1x8x4x8xf32>
    %3 = vector.shape_cast %2 : vector<1x8x4x8xf32> to vector<8x4x8xf32>
    %c0_7 = arith.constant 0 : index
    %c0_8 = arith.constant 0 : index
    %c0_9 = arith.constant 0 : index
    %c0_10 = arith.constant 0 : index
    %4 = vector.load %arg3[%c0_7, %c0_8, %c0_9, %c0_10] : memref<1x8x4x8xf32, #tpu.memory_space<vmem>>, vector<1x8x4x8xf32>
    %5 = vector.shape_cast %4 : vector<1x8x4x8xf32> to vector<8x4x8xf32>
    %6 = vector.extract_strided_slice %1 {offsets = [0, 0, 0], sizes = [8, 1, 8], strides = [1, 1, 1]} : vector<8x4x8xf32> to vector<8x1x8xf32>
    %7 = vector.shape_cast %6 : vector<8x1x8xf32> to vector<8x8xf32>
    %cst = arith.constant 1.250000e-01 : f32
    %8 = vector.broadcast %cst : f32 to vector<8x8xf32>
    %9 = arith.mulf %7, %8 : vector<8x8xf32>
    %10 = vector.extract_strided_slice %3 {offsets = [0, 0, 0], sizes = [8, 1, 8], strides = [1, 1, 1]} : vector<8x4x8xf32> to vector<8x1x8xf32>
    %11 = vector.shape_cast %10 : vector<8x1x8xf32> to vector<8x8xf32>
    %12 = vector.extract_strided_slice %5 {offsets = [0, 0, 0], sizes = [8, 1, 8], strides = [1, 1, 1]} : vector<8x4x8xf32> to vector<8x1x8xf32>
    %13 = vector.shape_cast %12 : vector<8x1x8xf32> to vector<8x8xf32>
    %cst_11 = arith.constant dense<0.000000e+00> : vector<8x8xf32>
    %14 = tpu.matmul %9, %11, %cst_11 {dimension_numbers = #tpu.dot_dimension_numbers<[1], [1], [0], [0], [0, 0, 1, 0], [], []>} : vector<8x8xf32>, vector<8x8xf32>, vector<8x8xf32> -> vector<8x8xf32>
    %cst_12 = arith.constant dense<0xFF800000> : vector<8xf32>
    %15 = vector.multi_reduction <maximumf>, %14, %cst_12 [1] : vector<8x8xf32> to vector<8xf32>
    %16 = vector.shape_cast %15 : vector<8xf32> to vector<8x1xf32>
    %17 = vector.broadcast %16 : vector<8x1xf32> to vector<8x8xf32>
    %18 = arith.subf %14, %17 : vector<8x8xf32>
    %19 = math.exp %18 : vector<8x8xf32>
    %cst_13 = arith.constant dense<0.000000e+00> : vector<8xf32>
    %20 = vector.multi_reduction <add>, %19, %cst_13 [1] : vector<8x8xf32> to vector<8xf32>
    %21 = vector.shape_cast %20 : vector<8xf32> to vector<8x1xf32>
    %22 = tpu.reciprocal %21 {approx = true} : vector<8x1xf32> -> vector<8x1xf32>
    %23 = vector.broadcast %22 : vector<8x1xf32> to vector<8x8xf32>
    %24 = arith.mulf %19, %23 : vector<8x8xf32>
    %cst_14 = arith.constant dense<0.000000e+00> : vector<8x8xf32>
    %25 = tpu.matmul %24, %13, %cst_14 {dimension_numbers = #tpu.dot_dimension_numbers<[1], [0], [0], [1], [0, 0, 1, 1], [], []>} : vector<8x8xf32>, vector<8x8xf32>, vector<8x8xf32> -> vector<8x8xf32>
    %26 = vector.extract_strided_slice %1 {offsets = [0, 1, 0], sizes = [8, 1, 8], strides = [1, 1, 1]} : vector<8x4x8xf32> to vector<8x1x8xf32>
    %27 = vector.shape_cast %26 : vector<8x1x8xf32> to vector<8x8xf32>
    %cst_15 = arith.constant 1.250000e-01 : f32
    %28 = vector.broadcast %cst_15 : f32 to vector<8x8xf32>
    %29 = arith.mulf %27, %28 : vector<8x8xf32>
    %30 = vector.extract_strided_slice %3 {offsets = [0, 1, 0], sizes = [8, 1, 8], strides = [1, 1, 1]} : vector<8x4x8xf32> to vector<8x1x8xf32>
    %31 = vector.shape_cast %30 : vector<8x1x8xf32> to vector<8x8xf32>
    %32 = vector.extract_strided_slice %5 {offsets = [0, 1, 0], sizes = [8, 1, 8], strides = [1, 1, 1]} : vector<8x4x8xf32> to vector<8x1x8xf32>
    %33 = vector.shape_cast %32 : vector<8x1x8xf32> to vector<8x8xf32>
    %cst_16 = arith.constant dense<0.000000e+00> : vector<8x8xf32>
    %34 = tpu.matmul %29, %31, %cst_16 {dimension_numbers = #tpu.dot_dimension_numbers<[1], [1], [0], [0], [0, 0, 1, 0], [], []>} : vector<8x8xf32>, vector<8x8xf32>, vector<8x8xf32> -> vector<8x8xf32>
    %cst_17 = arith.constant dense<0xFF800000> : vector<8xf32>
    %35 = vector.multi_reduction <maximumf>, %34, %cst_17 [1] : vector<8x8xf32> to vector<8xf32>
    %36 = vector.shape_cast %35 : vector<8xf32> to vector<8x1xf32>
    %37 = vector.broadcast %36 : vector<8x1xf32> to vector<8x8xf32>
    %38 = arith.subf %34, %37 : vector<8x8xf32>
    %39 = math.exp %38 : vector<8x8xf32>
    %cst_18 = arith.constant dense<0.000000e+00> : vector<8xf32>
    %40 = vector.multi_reduction <add>, %39, %cst_18 [1] : vector<8x8xf32> to vector<8xf32>
    %41 = vector.shape_cast %40 : vector<8xf32> to vector<8x1xf32>
    %42 = tpu.reciprocal %41 {approx = true} : vector<8x1xf32> -> vector<8x1xf32>
    %43 = vector.broadcast %42 : vector<8x1xf32> to vector<8x8xf32>
    %44 = arith.mulf %39, %43 : vector<8x8xf32>
    %cst_19 = arith.constant dense<0.000000e+00> : vector<8x8xf32>
    %45 = tpu.matmul %44, %33, %cst_19 {dimension_numbers = #tpu.dot_dimension_numbers<[1], [0], [0], [1], [0, 0, 1, 1], [], []>} : vector<8x8xf32>, vector<8x8xf32>, vector<8x8xf32> -> vector<8x8xf32>
    %46 = vector.extract_strided_slice %1 {offsets = [0, 2, 0], sizes = [8, 1, 8], strides = [1, 1, 1]} : vector<8x4x8xf32> to vector<8x1x8xf32>
    %47 = vector.shape_cast %46 : vector<8x1x8xf32> to vector<8x8xf32>
    %cst_20 = arith.constant 1.250000e-01 : f32
    %48 = vector.broadcast %cst_20 : f32 to vector<8x8xf32>
    %49 = arith.mulf %47, %48 : vector<8x8xf32>
    %50 = vector.extract_strided_slice %3 {offsets = [0, 2, 0], sizes = [8, 1, 8], strides = [1, 1, 1]} : vector<8x4x8xf32> to vector<8x1x8xf32>
    %51 = vector.shape_cast %50 : vector<8x1x8xf32> to vector<8x8xf32>
    %52 = vector.extract_strided_slice %5 {offsets = [0, 2, 0], sizes = [8, 1, 8], strides = [1, 1, 1]} : vector<8x4x8xf32> to vector<8x1x8xf32>
    %53 = vector.shape_cast %52 : vector<8x1x8xf32> to vector<8x8xf32>
    %cst_21 = arith.constant dense<0.000000e+00> : vector<8x8xf32>
    %54 = tpu.matmul %49, %51, %cst_21 {dimension_numbers = #tpu.dot_dimension_numbers<[1], [1], [0], [0], [0, 0, 1, 0], [], []>} : vector<8x8xf32>, vector<8x8xf32>, vector<8x8xf32> -> vector<8x8xf32>
    %cst_22 = arith.constant dense<0xFF800000> : vector<8xf32>
    %55 = vector.multi_reduction <maximumf>, %54, %cst_22 [1] : vector<8x8xf32> to vector<8xf32>
    %56 = vector.shape_cast %55 : vector<8xf32> to vector<8x1xf32>
    %57 = vector.broadcast %56 : vector<8x1xf32> to vector<8x8xf32>
    %58 = arith.subf %54, %57 : vector<8x8xf32>
    %59 = math.exp %58 : vector<8x8xf32>
    %cst_23 = arith.constant dense<0.000000e+00> : vector<8xf32>
    %60 = vector.multi_reduction <add>, %59, %cst_23 [1] : vector<8x8xf32> to vector<8xf32>
    %61 = vector.shape_cast %60 : vector<8xf32> to vector<8x1xf32>
    %62 = tpu.reciprocal %61 {approx = true} : vector<8x1xf32> -> vector<8x1xf32>
    %63 = vector.broadcast %62 : vector<8x1xf32> to vector<8x8xf32>
    %64 = arith.mulf %59, %63 : vector<8x8xf32>
    %cst_24 = arith.constant dense<0.000000e+00> : vector<8x8xf32>
    %65 = tpu.matmul %64, %53, %cst_24 {dimension_numbers = #tpu.dot_dimension_numbers<[1], [0], [0], [1], [0, 0, 1, 1], [], []>} : vector<8x8xf32>, vector<8x8xf32>, vector<8x8xf32> -> vector<8x8xf32>
    %66 = vector.extract_strided_slice %1 {offsets = [0, 3, 0], sizes = [8, 1, 8], strides = [1, 1, 1]} : vector<8x4x8xf32> to vector<8x1x8xf32>
    %67 = vector.shape_cast %66 : vector<8x1x8xf32> to vector<8x8xf32>
    %cst_25 = arith.constant 1.250000e-01 : f32
    %68 = vector.broadcast %cst_25 : f32 to vector<8x8xf32>
    %69 = arith.mulf %67, %68 : vector<8x8xf32>
    %70 = vector.extract_strided_slice %3 {offsets = [0, 3, 0], sizes = [8, 1, 8], strides = [1, 1, 1]} : vector<8x4x8xf32> to vector<8x1x8xf32>
    %71 = vector.shape_cast %70 : vector<8x1x8xf32> to vector<8x8xf32>
    %72 = vector.extract_strided_slice %5 {offsets = [0, 3, 0], sizes = [8, 1, 8], strides = [1, 1, 1]} : vector<8x4x8xf32> to vector<8x1x8xf32>
    %73 = vector.shape_cast %72 : vector<8x1x8xf32> to vector<8x8xf32>
    %cst_26 = arith.constant dense<0.000000e+00> : vector<8x8xf32>
    %74 = tpu.matmul %69, %71, %cst_26 {dimension_numbers = #tpu.dot_dimension_numbers<[1], [1], [0], [0], [0, 0, 1, 0], [], []>} : vector<8x8xf32>, vector<8x8xf32>, vector<8x8xf32> -> vector<8x8xf32>
    %cst_27 = arith.constant dense<0xFF800000> : vector<8xf32>
    %75 = vector.multi_reduction <maximumf>, %74, %cst_27 [1] : vector<8x8xf32> to vector<8xf32>
    %76 = vector.shape_cast %75 : vector<8xf32> to vector<8x1xf32>
    %77 = vector.broadcast %76 : vector<8x1xf32> to vector<8x8xf32>
    %78 = arith.subf %74, %77 : vector<8x8xf32>
    %79 = math.exp %78 : vector<8x8xf32>
    %cst_28 = arith.constant dense<0.000000e+00> : vector<8xf32>
    %80 = vector.multi_reduction <add>, %79, %cst_28 [1] : vector<8x8xf32> to vector<8xf32>
    %81 = vector.shape_cast %80 : vector<8xf32> to vector<8x1xf32>
    %82 = tpu.reciprocal %81 {approx = true} : vector<8x1xf32> -> vector<8x1xf32>
    %83 = vector.broadcast %82 : vector<8x1xf32> to vector<8x8xf32>
    %84 = arith.mulf %79, %83 : vector<8x8xf32>
    %cst_29 = arith.constant dense<0.000000e+00> : vector<8x8xf32>
    %85 = tpu.matmul %84, %73, %cst_29 {dimension_numbers = #tpu.dot_dimension_numbers<[1], [0], [0], [1], [0, 0, 1, 1], [], []>} : vector<8x8xf32>, vector<8x8xf32>, vector<8x8xf32> -> vector<8x8xf32>
    %86 = tpu.concatenate %25, %45, %65, %85 in 1 : vector<8x8xf32>, vector<8x8xf32>, vector<8x8xf32>, vector<8x8xf32> -> vector<8x32xf32>
    %c0_30 = arith.constant 0 : index
    %c0_31 = arith.constant 0 : index
    %c0_32 = arith.constant 0 : index
    %87 = vector.load %arg4[%c0_30, %c0_31, %c0_32] : memref<1x8x32xf32, #tpu.memory_space<vmem>>, vector<1x8x32xf32>
    %88 = vector.shape_cast %87 : vector<1x8x32xf32> to vector<8x32xf32>
    %89 = vector.shape_cast %86 : vector<8x32xf32> to vector<1x8x32xf32>
    tpu.vector_store %arg4[%c0_30, %c0_31, %c0_32], %89 {strides = array<i32>} : memref<1x8x32xf32, #tpu.memory_space<vmem>>, vector<1x8x32xf32>,
    return
  }
  func.func @transform_0(%arg0: i32) -> (i32, i32, i32, i32) {
    %c0_i32 = arith.constant 0 : i32
    %c0_i32_0 = arith.constant 0 : i32
    %c0_i32_1 = arith.constant 0 : i32
    %c0_i32_2 = arith.constant 0 : i32
    return %arg0, %c0_i32, %c0_i32_0, %c0_i32_1 : i32, i32, i32, i32
  }
  func.func @transform_1(%arg0: i32) -> (i32, i32, i32, i32) {
    %c0_i32 = arith.constant 0 : i32
    %c0_i32_0 = arith.constant 0 : i32
    %c0_i32_1 = arith.constant 0 : i32
    %c0_i32_2 = arith.constant 0 : i32
    return %arg0, %c0_i32, %c0_i32_0, %c0_i32_1 : i32, i32, i32, i32
  }
  func.func @transform_2(%arg0: i32) -> (i32, i32, i32, i32) {
    %c0_i32 = arith.constant 0 : i32
    %c0_i32_0 = arith.constant 0 : i32
    %c0_i32_1 = arith.constant 0 : i32
    %c0_i32_2 = arith.constant 0 : i32
    return %arg0, %c0_i32, %c0_i32_0, %c0_i32_1 : i32, i32, i32, i32
  }
  func.func @transform_3(%arg0: i32) -> (i32, i32, i32) {
    %c0_i32 = arith.constant 0 : i32
    %c0_i32_0 = arith.constant 0 : i32
    %c0_i32_1 = arith.constant 0 : i32
    return %arg0, %c0_i32, %c0_i32_0 : i32, i32, i32
  }
}

</mosaic_0001>

<bundles_post_ra>
// kernel: tpu_custom_call.1
= control target key start
LH: loop header
LB: loop body
LE: loop exit
PB: predicated region body
PF: predicated region fallthrough
CT: control target
= control target key end

     0   :  { %s2197_s0 = inlined_call_operand.hbm [shape: f32[2,8,4,8], index: 0, kind: input, shape index: {}]   ;;  %s2198_s1 = inlined_call_operand.hbm [shape: f32[2,8,4,8], index: 1, kind: input, shape index: {}]   ;;  %s2199_s2 = inlined_call_operand.hbm [shape: f32[2,8,4,8], index: 2, kind: input, shape index: {}]   ;;  %s2200_s3 = inlined_call_operand.hbm [shape: f32[2,8,32], index: 3, kind: output, shape index: {}]  }
   0x1   :  { %2207 = sst [smem:[#allocation12_spill]] %s2197_s0 }
   0x2   :  { %8 = vsyncpa [#allocation3], 0 }
   0x3   :  { %10 = vsyncpa [#allocation3 + $0x1], 0 }
   0x4   :  { %11 = vsyncpa [#allocation6], 0 }
   0x5   :  { %13 = vsyncpa [#allocation6 + $0x1], 0 }
   0x6   :  { %14 = vsyncpa [#allocation4], 0 }
   0x7   :  { %16 = vsyncpa [#allocation4 + $0x1], 0  ;;  %s1644_s12 = smov 0   ;;  %s1646_s13 = smov 0  }
   0x8   :  { %s1648_s14 = smov 0   ;;  %s1650_s15 = smov 0  }
   0x9 LB: > { %s1665_s16 = sadd.s32 4294967295, %s1611_s15   ;;  %s1280_s17 = sadd.s32 4294967294, %s1611_s15   ;;  %s1611_s15 = sphi %s1650_s15, %s2226_s15   ;;  %s1607_s14 = sphi %s1648_s14, %s2225_s14   ;;  %s1603_s13 = sphi %s1646_s13, %s2224_s13   ;;  %s1599_s12 = sphi %s1644_s12, %s2223_s12  }
   0xa   : > { %s1669_s18 = sadd.s32 1, %s1611_s15   ;;  %s29_s19 = sadd.s32 1, %s1607_s14 }
   0xb   : > { %s26_s20 = ssub.s32 %s1611_s15, %s1669_s18  ;;  %p36_p0 = scmp.ne.s32.totalorder %s1607_s14, %s1603_s13 }
   0xc   : > { %p27_p1 = scmp.eq.s32.totalorder %s26_s20, 0  ;;  %p37_p2 = scmp.eq.s32.totalorder %s1611_s15, 0 }
   0xd   : > { %p42_p3 = scmp.ne.s32.totalorder %s1603_s13, %s1599_s12  ;;  %p43_p4 = scmp.eq.s32.totalorder %s1665_s16, 0 }
   0xe   : > { %s1681_s21 = scalar_select %p27_p1, %s1607_s14, %s29_s19  }
   0xf   : > { %p38_p5 = por %p37_p2, %p36_p0  ;;  %p1683_p6 = por %p43_p4, %p42_p3 }
  0x10   : > { %p118_p7 = scmp.eq.s32.totalorder %s1665_s16, 1  ;;  %p124_p8 = scmp.eq.s32.totalorder %s1280_s17, 1 }
  0x11   : > { %s2208_s22 = scalar_select %p1683_p6, 1, 0 }
  0x12   : > { %p1394_p10 = scmp.lt.s32.totalorder %s1611_s15, 2  ;;  %p1690_p11 = por %p118_p7, %p36_p0 }
  0x13   : > { %p1694_p12 = por %p124_p8, %p42_p3  ;;  %s144_s25 = sand.u32 1, %s1607_s14  }
  0x14   : > { %s2209_s23 = scalar_select %p1690_p11, 1, 0 }
  0x15   : > { %s2210_s24 = scalar_select %p1694_p12, 1, 0 }
  0x16   : > { %s1700_s26 = sshll.u32 %s1611_s15, 9  ;;  %s1704_s27 = sshll.u32 %s144_s25, 5 }
  0x17   : > { %p1706_p13 = pnand %p1394_p10, %p38_p5  ;;  %s165_s29 = sand.u32 1, %s1611_s15  }
  0x18   : > { %s1715_s5 = scalar_lea.hbm %s2198_s1, %s1700_s26  ;;  %s169_s6 = scalar_lea.vmem [#allocation5], %s1704_s27 }
  0x19   : > { %s176_s7 = sshll.u32 %s169_s6, 4  ;;  %s1721_s8 = scalar_lea.sflag [#allocation6], %s165_s29  ;;  %s1718_s7 = int_to_ptr.vmem [resolvable:$true] %s176_s7 }
  0x1a   : > { %s1451_s9 = scalar_lea.hbm %s1715_s5, 512  ;;  %p1727_p2 = pneg %p1706_p13 }
  0x1b   : > { %p1452_p1 = scmp.ne.s32.totalorder %s1715_s5, %s1451_s9  ;;  %s1456_s19 = scalar_lea.hbm %s2198_s1, 1024 }
  0x1c   : > { %p1457_p5 = scmp.lt.u32.totalorder %s1715_s5, %s2198_s1  ;;  %p1458_p7 = scmp.lt.u32.totalorder %s1456_s19, %s1451_s9 }
  0x1d   : > { %p1454_p3 = pnand %p1727_p2, %p1452_p1  ;;  %p1460_p10 = scmp.lt.u32.totalorder %s1451_s9, %s1715_s5 }
  0x1e   : > { %p1459_p8 = por %p1458_p7, %p1457_p5 }
  0x1f   : > { %p1455_p4 = pneg %p1454_p3 }
  0x20   : > { %p1461_p9 = por %p1460_p10, %p1459_p8 }
  0x22   : > { %p1462_p0 = pnand %p1461_p9, %p1455_p4 }
  0x24   : > { %1465 = shalt.err (!%p1462_p0)
}
  0x25   : > { %s1466_s29 = scalar_lea.vmem %s1718_s7, 512  ;;  %s1613_s4 = smov [#allocation5]  }
  0x26   : > { %p1467_p1 = scmp.ne.s32.totalorder %s1718_s7, %s1466_s29  ;;  %s1471_s6 = sshll.u32 %s1613_s4, 4  ;;  %s1472_s6 = int_to_ptr.vmem [resolvable:$false] %s1471_s6 }
  0x27   : > { %s1473_s11 = scalar_lea.vmem %s1472_s6, 1024  ;;  %p1474_p11 = scmp.lt.s32.totalorder %s1718_s7, %s1472_s6 }
  0x28   : > { %p1469_p3 = pnand %p1467_p1, %p1727_p2  ;;  %p1475_p6 = scmp.lt.s32.totalorder %s1473_s11, %s1466_s29 }
  0x2a   : > { %p1470_p12 = pneg %p1469_p3  ;;  %p1476_p5 = por %p1475_p6, %p1474_p11 }
  0x2c   : > { %p1477_p7 = pnand %p1476_p5, %p1470_p12 }
  0x2e   : > { %1480 = shalt.err (!%p1477_p7)
}
  0x2f   : > { %s2203_s9 = smov 64   ;;  %s2205_s17 = smov 4  }
  0x30   : > { %1386 = dma.hbm_to_vmem [thread:$0]  (!%p1706_p13), %s1715_s5, 512, %s1718_s7, %s1721_s8, %s2203_s9, %s2203_s9, %s2205_s17  }
  0x31   : > { %p205_p6 = scmp.lt.s32.totalorder %s1611_s15, 3  ;;  %s2213_s0 = sld [smem:[#allocation12_spill]] }
  0x32   : > { %p2214_p9 = scmp.ge.s32.totalorder %s1611_s15, 1  ;;  %s148_s4 = scalar_lea.vmem [#allocation2], %s1704_s27 }
  0x33   : > { %s155_s6 = sshll.u32 %s148_s4, 4  ;;  %s1772_s5 = scalar_lea.sflag [#allocation3], %s144_s25  ;;  %s1768_s6 = int_to_ptr.vmem [resolvable:$true] %s155_s6 }
  0x34   : > { %p1763_p11 = pnand %p2214_p9, %p205_p6 }
  0x36   : > { %s2215_s29 = scalar_select %p1763_p11, 1, 0 }
  0x37   : > { %s1759_s30 = scalar_lea.hbm %s2213_s0, %s1700_s26  ;;  %s1486_s20 = scalar_lea.hbm %s2213_s0, 1024 }
  0x38   : > { %s1481_s7 = scalar_lea.hbm %s1759_s30, 512  ;;  %p1487_p8 = scmp.lt.u32.totalorder %s1759_s30, %s2213_s0 }
  0x39   : > { %p1482_p12 = scmp.ne.s32.totalorder %s1759_s30, %s1481_s7  ;;  %p1488_p10 = scmp.lt.u32.totalorder %s1486_s20, %s1481_s7 }
  0x3a   : > { %p1490_p3 = scmp.lt.u32.totalorder %s1481_s7, %s1759_s30 }
  0x3b   : > { %p1484_p0 = pnand %p1482_p12, %p1727_p2  ;;  %p1489_p1 = por %p1488_p10, %p1487_p8 }
  0x3d   : > { %p1485_p4 = pneg %p1484_p0  ;;  %p1491_p5 = por %p1490_p3, %p1489_p1 }
  0x3f   : > { %p1492_p7 = pnand %p1491_p5, %p1485_p4 }
  0x41   : > { %1495 = shalt.err (!%p1492_p7)
}
  0x42   : > { %s1496_s25 = scalar_lea.vmem %s1768_s6, 512  ;;  %s1616_s4 = smov [#allocation2]  }
  0x43   : > { %p1497_p6 = scmp.ne.s32.totalorder %s1768_s6, %s1496_s25  ;;  %s1501_s11 = sshll.u32 %s1616_s4, 4  ;;  %s1502_s11 = int_to_ptr.vmem [resolvable:$false] %s1501_s11 }
  0x44   : > { %s1503_s9 = scalar_lea.vmem %s1502_s11, 1024  ;;  %p1504_p0 = scmp.lt.s32.totalorder %s1768_s6, %s1502_s11 }
  0x45   : > { %p1499_p9 = pnand %p1497_p6, %p1727_p2  ;;  %p1505_p11 = scmp.lt.s32.totalorder %s1503_s9, %s1496_s25 }
  0x47   : > { %p1500_p12 = pneg %p1499_p9  ;;  %p1506_p8 = por %p1505_p11, %p1504_p0 }
  0x49   : > { %p1507_p10 = pnand %p1506_p8, %p1500_p12 }
  0x4b   : > { %1510 = shalt.err (!%p1507_p10)
}
  0x4c   : > { %s2216_s17 = smov 4   ;;  %s2217_s7 = smov 64  }
  0x4d   : > { %1383 = dma.hbm_to_vmem [thread:$0]  (!%p1706_p13), %s1759_s30, 512, %s1768_s6, %s1772_s5, %s2217_s7, %s2217_s7, %s2216_s17  }
  0x4e   : > { %s1803_s4 = scalar_lea.hbm %s2199_s2, %s1700_s26  ;;  %s190_s25 = scalar_lea.vmem [#allocation7], %s1704_s27 }
  0x4f   : > { %s197_s11 = sshll.u32 %s190_s25, 4  ;;  %s1511_s9 = scalar_lea.hbm %s1803_s4, 512  ;;  %s1806_s11 = int_to_ptr.vmem [resolvable:$true] %s197_s11 }
  0x50   : > { %p1512_p11 = scmp.ne.s32.totalorder %s1803_s4, %s1511_s9  ;;  %s1516_s6 = scalar_lea.hbm %s2199_s2, 1024 }
  0x51   : > { %p1517_p3 = scmp.lt.u32.totalorder %s1803_s4, %s2199_s2  ;;  %p1518_p5 = scmp.lt.u32.totalorder %s1516_s6, %s1511_s9 }
  0x52   : > { %p1514_p4 = pnand %p1512_p11, %p1727_p2  ;;  %p1520_p6 = scmp.lt.u32.totalorder %s1511_s9, %s1803_s4 }
  0x53   : > { %p1519_p7 = por %p1518_p5, %p1517_p3 }
  0x54   : > { %p1515_p1 = pneg %p1514_p4 }
  0x55   : > { %p1521_p9 = por %p1520_p6, %p1519_p7 }
  0x57   : > { %p1522_p12 = pnand %p1521_p9, %p1515_p1 }
  0x59   : > { %1525 = shalt.err (!%p1522_p12)
}
  0x5a   : > { %s1526_s27 = scalar_lea.vmem %s1806_s11, 512  ;;  %s1617_s0 = smov [#allocation7]  }
  0x5b   : > { %p1527_p0 = scmp.ne.s32.totalorder %s1806_s11, %s1526_s27  ;;  %s1531_s19 = sshll.u32 %s1617_s0, 4  ;;  %s1532_s19 = int_to_ptr.vmem [resolvable:$false] %s1531_s19 }
  0x5c   : > { %s1533_s20 = scalar_lea.vmem %s1532_s19, 1024  ;;  %p1534_p11 = scmp.lt.s32.totalorder %s1806_s11, %s1532_s19 }
  0x5d   : > { %p1529_p8 = pnand %p1527_p0, %p1727_p2  ;;  %p1535_p4 = scmp.lt.s32.totalorder %s1533_s20, %s1526_s27 }
  0x5f   : > { %p1530_p10 = pneg %p1529_p8  ;;  %p1536_p3 = por %p1535_p4, %p1534_p11 }
  0x61   : > { %p1537_p5 = pnand %p1536_p3, %p1530_p10 }
  0x63   : > { %1540 = shalt.err (!%p1537_p5)
}
  0x64   : > { %1389 = dma.hbm_to_vmem [thread:$0]  (!%p1706_p13), %s1803_s4, 512, %s1806_s11, %s1721_s8, %s2217_s7, %s2217_s7, %s2216_s17  }
  0x65   : > { %p2218_p2 = scmp.ne.s32.totalorder %s2215_s29, 0 }
  0x66   : > { %s1836_s10 = sand.u32 (!%p2218_p2), 1, %s1603_s13   ;;  %p2219_p1 = scmp.ne.s32.totalorder (!%p2218_p2), %s2208_s22, 0 }
  0x67   : > { %209 = sbr.rel (%p2218_p2) target bundleno = 1539 (0x603), region = 32  ;;  %s1839_s25 = sshll.u32 (!%p2218_p2), %s1836_s10, 5 }
  0x68   : > { %s212_s28 = scalar_lea.sflag (!%p2218_p2), [#allocation3], %s1836_s10  ;;  %s1843_s9 = scalar_lea.vmem (!%p2218_p2), [#allocation2], %s1839_s25 }
  0x6e   : > { %1586 = dma.done.wait (%p2219_p1), %s212_s28, 512  }
  0x6f   : > { %1588 = vsyncadd (%p2219_p1), %s212_s28, 4294966784  ;;  %s220_s8 = sand.u32 1, %s1665_s16   ;;  %s224_s17 = scalar_lea.vmem [#allocation5], %s1839_s25 }
  0x70   : > { %s221_s29 = scalar_lea.sflag [#allocation6], %s220_s8 }
  0x71   : > { %1590 = dma.done.wait (%p2219_p1), %s221_s29, 1024  }
  0x72   : > { %1592 = vsyncadd (%p2219_p1), %s221_s29, 4294966272  ;;  %v1618_v0 = vmov 0.0   ;;  %vm1619_vm0 = vmmov 0   ;;  %vm307_vm1 = vcmask 1041409   ;;  %vm310_vm2 = vcmask 1042434   ;;  %s233_s22 = scalar_lea.vmem [#allocation7], %s1839_s25 }
  0x73   : > { %1332 = vmatprep.subr.mxu0 %v1618_v0  ;;  %1337 = vmatprep.subr.mxu1 %v1618_v0  ;;  %vm313_vm3 = vcmask 1043459   ;;  %vm316_vm4 = vcmask 1044484   ;;  %vm319_vm5 = vcmask 1045509   ;;  %v1861_v1 = vld [vmem:[%s224_s17] sm:$0xf]  ;;  %vm322_vm6 = vcmask 1046534  }
  0x74   : > { %1334 = vmatprep.mubr.msk.f32.mxu0 %vm1619_vm0, %v1618_v0  ;;  %1339 = vmatprep.mubr.msk.f32.mxu1 %vm1619_vm0, %v1618_v0  ;;  %v1863_v2 = vld [vmem:[%s224_s17 + $0x4] sm:$0xf]  ;;  %v1865_v3 = vld [vmem:[%s224_s17 + $0x8] sm:$0xf]  ;;  %v1867_v4 = vld [vmem:[%s224_s17 + $0xc] sm:$0xf] }
  0x75   : > { %v1869_v5 = vld [vmem:[%s224_s17 + $0x10] sm:$0xf]  ;;  %v1871_v6 = vld [vmem:[%s224_s17 + $0x14] sm:$0xf]  ;;  %v1873_v7 = vld [vmem:[%s224_s17 + $0x18] sm:$0xf] }
  0x76   : > { %v1875_v8 = vld [vmem:[%s224_s17 + $0x1c] sm:$0xf]  ;;  %v335_v9 = vrot.slane %v1863_v2, 7  ;;  %v337_v10 = vrot.slane %v1865_v3, 6  ;;  %vm325_vm7 = vcmask 1047559   ;;  %v339_v11 = vrot.slane %v1867_v4, 5 }
  0x77   : > { %v341_v12 = vrot.slane %v1869_v5, 4  ;;  %v266_v13 = vld [vmem:[%s1843_s9] sm:$0xf]  ;;  %v343_v15 = vrot.slane %v1871_v6, 3  ;;  %v345_v16 = vrot.slane %v1873_v7, 2  ;;  %vm349_vm8 = vcmask 64512  }
  0x78   : > { %v336_v14 = vsel %vm307_vm1, %v335_v9, %v1861_v1  ;;  %v267_v17 = vld [vmem:[%s1843_s9 + $0x4] sm:$0xf]  ;;  %v347_v19 = vrot.slane %v1875_v8, 1  ;;  %v268_v20 = vld [vmem:[%s1843_s9 + $0x8] sm:$0xf]  ;;  %v1891_v22 = vmul.f32 0.125, %v266_v13 }
  0x79   : > { %v338_v18 = vsel %vm310_vm2, %v337_v10, %v336_v14  ;;  %v269_v21 = vld [vmem:[%s1843_s9 + $0xc] sm:$0xf]  ;;  %v270_v24 = vld [vmem:[%s1843_s9 + $0x10] sm:$0xf]  ;;  %v271_v25 = vld [vmem:[%s1843_s9 + $0x14] sm:$0xf] }
  0x7a   : > { %v340_v23 = vsel %vm313_vm3, %v339_v11, %v338_v18  ;;  %v272_v26 = vld [vmem:[%s1843_s9 + $0x18] sm:$0xf]  ;;  %v273_v28 = vld [vmem:[%s1843_s9 + $0x1c] sm:$0xf]  ;;  %v1899_v29 = vmul.f32 0.125, %v267_v17  ;;  %v1901_v30 = vmul.f32 0.125, %v268_v20 }
  0x7b   : > { %v342_v27 = vsel %vm316_vm4, %v341_v12, %v340_v23  ;;  %v1903_v31 = vmul.f32 0.125, %v269_v21  ;;  %v1906_v33 = vmul.f32 0.125, %v270_v24  ;;  %v1908_v34 = vmul.f32 0.125, %v271_v25  ;;  %v1942_v61 = vld [vmem:[%s233_s22 + $0x4] sm:$0xf]  ;;  %s1620_s7 = smov 8  }
  0x7c   : > { %v344_v32 = vsel %vm319_vm5, %v343_v15, %v342_v27  ;;  %v1910_v35 = vmul.f32 0.125, %v272_v26  ;;  %v1913_v37 = vmul.f32 0.125, %v273_v28  ;;  %v306_v38 = vrot.slane %v1899_v29, 7  ;;  %v1944_v62 = vld [vmem:[%s233_s22 + $0x8] sm:$0xf]  ;;  %s1621_s4 = smov 16  }
  0x7d   : > { %v346_v36 = vsel %vm322_vm6, %v345_v16, %v344_v32  ;;  %v309_v39 = vrot.slane %v1901_v30, 6  ;;  %v312_v41 = vrot.slane %v1903_v31, 5  ;;  %v315_v42 = vrot.slane %v1906_v33, 4  ;;  %v1947_v9 = vld [vmem:[%s233_s22] sm:$0xf]  ;;  %s1622_s11 = smov 24  }
  0x7e   : > { %v348_v40 = vsel %vm325_vm7, %v347_v19, %v346_v36  ;;  %v308_v43 = vsel %vm307_vm1, %v306_v38, %v1891_v22  ;;  %v318_v44 = vrot.slane %v1908_v34, 3  ;;  %v321_v46 = vrot.slane %v1910_v35, 2  ;;  %v1949_v10 = vld [vmem:[%s233_s22 + $0xc] sm:$0xf]  ;;  %v1952_v12 = vld [vmem:[%s233_s22 + $0x10] sm:$0xf] }
  0x7f   : > { %1333 = vmatpush3.xpose.msk.msra.mxu0 %vm349_vm8, %v348_v40  ;;  %v311_v45 = vsel %vm310_vm2, %v309_v39, %v308_v43  ;;  %v324_v48 = vrot.slane %v1913_v37, 1  ;;  %v443_v63 = vrot.slane %v1942_v61, 7  ;;  %v445_v11 = vrot.slane %v1944_v62, 6  ;;  %v1954_v13 = vld [vmem:[%s233_s22 + $0x14] sm:$0xf]  ;;  %s1296_s30 = sshll.u32 %s1836_s10, 3 }
  0x80   : > { %1347 = vmatprep.subr.mxu0 %v1618_v0  ;;  %v314_v47 = vsel %vm313_vm3, %v312_v41, %v311_v45  ;;  %v1956_v14 = vld [vmem:[%s233_s22 + $0x18] sm:$0xf]  ;;  %v1960_v16 = vld [vmem:[%s233_s22 + $0x1c] sm:$0xf]  ;;  %v447_v18 = vrot.slane %v1949_v10, 5  ;;  %v449_v19 = vrot.slane %v1952_v12, 4 }
  0x81   : > { %v317_v49 = vsel %vm316_vm4, %v315_v42, %v314_v47  ;;  %v444_v15 = vsel %vm307_vm1, %v443_v63, %v1947_v9  ;;  %v451_v20 = vrot.slane %v1954_v13, 3  ;;  %v453_v21 = vrot.slane %v1956_v14, 2  ;;  %s1310_s6 = sshll.u32 %s1665_s16, 7  ;;  %s265_s5 = scalar_lea.vmem [#allocation8], %s1296_s30 }
  0x82   : > { %v320_v50 = vsel %vm319_vm5, %v318_v44, %v317_v49  ;;  %v446_v17 = vsel %vm310_vm2, %v445_v11, %v444_v15  ;;  %v455_v24 = vrot.slane %v1960_v16, 1  ;;  %v545_v32 = vrot.slane %v1861_v1, 1  ;;  %s1167_s26 = sshll.u32 %s265_s5, 4  ;;  %s2153_s19 = scalar_lea.hbm %s2200_s3, %s1310_s6  ;;  %s2155_s26 = int_to_ptr.vmem [resolvable:$true] %s1167_s26 }
  0x83   : > { %v323_v51 = vsel %vm322_vm6, %v321_v46, %v320_v50  ;;  %v448_v23 = vsel %vm313_vm3, %v447_v18, %v446_v17  ;;  %v547_v36 = vrot.slane %v1865_v3, 7  ;;  %v746_v38 = vrot.slane %v1861_v1, 2  ;;  %s1154_s16 = scalar_lea.sflag [#allocation4], %s1836_s10  ;;  %s1541_s20 = scalar_lea.vmem %s2155_s26, 128 }
  0x84   : > { %v326_v52 = vsel %vm325_vm7, %v324_v48, %v323_v51  ;;  %v450_v25 = vsel %vm316_vm4, %v449_v19, %v448_v23  ;;  %v546_v39 = vsel %vm307_vm1, %v1863_v2, %v545_v32  ;;  %v531_v40 = vrot.slane %v1891_v22, 1  ;;  %p1542_p13 = scmp.ne.s32.totalorder %s2155_s26, %s1541_s20  ;;  %p2220_p7 = scmp.ne.s32.totalorder %s2209_s23, 0 }
  0x85   : > { %1335 = vmatmul.mubr.msk.f32.vlgmr.msra.gmra.mrb[0].mxu0 %vm349_vm8, %v326_v52  ;;  %v452_v26 = vsel %vm319_vm5, %v451_v20, %v450_v25  ;;  %v747_v41 = vrot.slane %v1863_v2, 1  ;;  %v549_v42 = vrot.slane %v1867_v4, 6  ;;  %v548_v43 = vsel %vm310_vm2, %v547_v36, %v546_v39  ;;  %s1623_s25 = smov [#allocation8]  }
  0x86   : > { %1349 = vmatprep.mubr.msk.f32.mxu0 %vm1619_vm0, %v1618_v0  ;;  %v454_v27 = vsel %vm322_vm6, %v453_v21, %v452_v26  ;;  %v533_v44 = vrot.slane %v1901_v30, 7  ;;  %v732_v45 = vrot.slane %v1891_v22, 2  ;;  %v733_v46 = vrot.slane %v1899_v29, 1  ;;  %p1543_p6 = pnand %p1542_p13, %p2220_p7  ;;  %s1545_s28 = sshll.u32 %s1623_s25, 4  ;;  %s1546_s28 = int_to_ptr.vmem [resolvable:$false] %s1545_s28 }
  0x87   : > { %v456_v28 = vsel %vm325_vm7, %v455_v24, %v454_v27  ;;  %v532_v47 = vsel %vm307_vm1, %v1899_v29, %v531_v40  ;;  %v748_v48 = vsel %vm307_vm1, %v747_v41, %v746_v38  ;;  %v947_v49 = vrot.slane %v1861_v1, 3  ;;  %s1547_s9 = scalar_lea.vmem %s1546_s28, 256  ;;  %p1548_p12 = scmp.lt.s32.totalorder %s2155_s26, %s1546_s28 }
  0x88   : > { %1338 = vmatpush3.msra.mxu1 %v456_v28  ;;  %v551_v50 = vrot.slane %v1869_v5, 5  ;;  %v948_v51 = vrot.slane %v1863_v2, 2  ;;  %v550_v52 = vsel %vm313_vm3, %v549_v42, %v548_v43  ;;  %v734_v1 = vsel %vm307_vm1, %v733_v46, %v732_v45  ;;  %p1544_p9 = pneg %p1543_p6  ;;  %p1549_p0 = scmp.lt.s32.totalorder %s1547_s9, %s1541_s20 }
  0x89   : > { %1342 = vmatprep.subr.mxu1 %v1618_v0  ;;  %v933_v2 = vrot.slane %v1891_v22, 3  ;;  %v934_v63 = vrot.slane %v1899_v29, 2  ;;  %v537_v15 = vrot.slane %v1906_v33, 5  ;;  %v752_v19 = vrot.slane %v1869_v5, 6 }
  0x8a   : > { %v552_v11 = vsel %vm316_vm4, %v551_v50, %v550_v52  ;;  %v949_v17 = vsel %vm307_vm1, %v948_v51, %v947_v49  ;;  %v736_v20 = vrot.slane %v1903_v31, 7  ;;  %v555_v21 = vrot.slane %v1873_v7, 3  ;;  %p1550_p8 = por %p1549_p0, %p1548_p12 }
  0x8b   : > { %v735_v22 = vsel %vm310_vm2, %v1901_v30, %v734_v1  ;;  %v936_v29 = vrot.slane %v1901_v30, 1  ;;  %v539_v24 = vrot.slane %v1908_v34, 4  ;;  %v935_v26 = vsel %vm307_vm1, %v934_v63, %v933_v2 }
  0x8c   : > { %v754_v28 = vrot.slane %v1871_v6, 5  ;;  %v738_v32 = vrot.slane %v1906_v33, 6  ;;  %v557_v36 = vrot.slane %v1875_v8, 2  ;;  %v737_v30 = vsel %vm313_vm3, %v736_v20, %v735_v22  ;;  %p1551_p10 = pnand %p1550_p8, %p1544_p9 }
  0x8d   : > { %v953_v39 = vrot.slane %v1869_v5, 7  ;;  %v541_v41 = vrot.slane %v1910_v35, 3  ;;  %v937_v43 = vsel %vm310_vm2, %v936_v29, %v935_v26  ;;  %v756_v45 = vrot.slane %v1873_v7, 4 }
  0x8e   : > { %v740_v46 = vrot.slane %v1908_v34, 5  ;;  %v955_v5 = vrot.slane %v1871_v6, 6  ;;  %v939_v49 = vrot.slane %v1906_v33, 7  ;;  %v941_v1 = vrot.slane %v1908_v34, 6 }
  0x8f   : > { %v744_v2 = vrot.slane %v1913_v37, 3  ;;  %v959_v63 = vrot.slane %v1875_v8, 4  ;;  %vm1147_vm9 = vcmask 130048   ;;  %vm1149_vm10 = vcmask 195584  }
  0x90   : > { %vm1151_vm11 = vcmask 261120  }
 0x158   : > { %v420_v53 = vpop.f32.mrb[0].mxu0 }
 0x159   : > { %v1336_v54 = vpop.f32.mrb[1].mxu0  ;;  %v424_v55 = vsel %vm349_vm8, %v420_v53, -inf }
 0x15a   : > { %425 = vmax.xlane.f32.xlu0 %v424_v55  ;;  %v535_v54 = vrot.slane %v1903_v31, 6 }
 0x1e7   : > { %v426_v56 = vpop.xlane.xlu0 %425 }
 0x1e8   : > { %v427_v57 = vsub.f32 %v420_v53, %v426_v56  ;;  %v553_v53 = vrot.slane %v1871_v6, 4  ;;  %v534_v56 = vsel %vm310_vm2, %v533_v44, %v532_v47  ;;  %v742_v6 = vrot.slane %v1910_v35, 4 }
 0x1e9   : > { %v536_v18 = vsel %vm313_vm3, %v535_v54, %v534_v56  ;;  %v758_v56 = vrot.slane %v1875_v8, 3 }
 0x1ea   : > { %v428_v58 = vmul.f32 1.442695, %v427_v57  ;;  %v749_v57 = vsel %vm310_vm2, %v1865_v3, %v748_v48  ;;  %v554_v23 = vsel %vm319_vm5, %v553_v53, %v552_v11  ;;  %v538_v27 = vsel %vm316_vm4, %v537_v15, %v536_v18 }
 0x1eb   : > { %v556_v40 = vsel %vm322_vm6, %v555_v21, %v554_v23  ;;  %v540_v44 = vsel %vm319_vm5, %v539_v24, %v538_v27  ;;  %v739_v48 = vsel %vm316_vm4, %v738_v32, %v737_v30  ;;  %v938_v53 = vsel %vm313_vm3, %v1903_v31, %v937_v43 }
 0x1ec   : > { %1435 = vpow2.f32 %v428_v58  ;;  %v750_v58 = vrot.slane %v1867_v4, 7  ;;  %v558_v51 = vsel %vm325_vm7, %v557_v36, %v556_v40  ;;  %v943_v11 = vrot.slane %v1910_v35, 5 }
 0x1f6   : > { %v1937_v59 = vpop.eup %1435 }
 0x1f7   : > { %v430_v60 = vsel %vm349_vm8, %v1937_v59, 0.0 }
 0x1f8   : > { %431 = vadd.xlane.f32.xlu0 %v430_v60  ;;  %v950_v60 = vrot.slane %v1865_v3, 1  ;;  %v751_v3 = vsel %vm313_vm3, %v750_v58, %v749_v57  ;;  %v741_v57 = vsel %vm319_vm5, %v740_v46, %v739_v48  ;;  %v957_v58 = vrot.slane %v1873_v7, 5 }
 0x1f9   : > { %v753_v38 = vsel %vm316_vm4, %v752_v19, %v751_v3  ;;  %v743_v34 = vsel %vm322_vm6, %v742_v6, %v741_v57  ;;  %v945_v19 = vrot.slane %v1913_v37, 4  ;;  %v654_v6 = vrot.slane %v1956_v14, 3 }
 0x1fa   : > { %v951_v25 = vsel %vm310_vm2, %v950_v60, %v949_v17  ;;  %v755_v47 = vsel %vm319_vm5, %v754_v28, %v753_v38  ;;  %v745_v18 = vsel %vm325_vm7, %v744_v2, %v743_v34  ;;  %v656_v57 = vrot.slane %v1960_v16, 2 }
 0x1fb   : > { %v952_v42 = vsel %vm313_vm3, %v1867_v4, %v951_v25  ;;  %v543_v4 = vrot.slane %v1913_v37, 2  ;;  %v757_v33 = vsel %vm322_vm6, %v756_v45, %v755_v47  ;;  %v1046_v2 = vrot.slane %v1947_v9, 3 }
 0x1fc   : > { %v954_v52 = vsel %vm316_vm4, %v953_v39, %v952_v42  ;;  %v759_v7 = vsel %vm325_vm7, %v758_v56, %v757_v33  ;;  %v849_v34 = vrot.slane %v1949_v10, 7 }
 0x1fd   : > { %v956_v31 = vsel %vm319_vm5, %v955_v5, %v954_v52 }
 0x1fe   : > { %v958_v15 = vsel %vm322_vm6, %v957_v58, %v956_v31  ;;  %v845_v31 = vrot.slane %v1947_v9, 2 }
 0x1ff   : > { %v960_v8 = vsel %vm325_vm7, %v959_v63, %v958_v15 }
 0x285   : > { %v432_v55 = vpop.xlane.xlu0 %431 }
 0x286   : > { %1437 = vrcp.f32 %v432_v55  ;;  %v542_v55 = vsel %vm322_vm6, %v541_v41, %v540_v44 }
 0x287   : > { %v544_v60 = vsel %vm325_vm7, %v543_v4, %v542_v55  ;;  %v648_v4 = vrot.slane %v1949_v10, 6  ;;  %v652_v55 = vrot.slane %v1954_v13, 4 }
 0x290   : > { %v1438_v50 = vpop.eup %1437 }
 0x291   : > { %v434_v54 = vmul.f32 %v1438_v50, %v1937_v59  ;;  %v940_v59 = vsel %vm316_vm4, %v939_v49, %v938_v53  ;;  %v644_v49 = vrot.slane %v1947_v9, 1  ;;  %v646_v50 = vrot.slane %v1944_v62, 7 }
 0x292   : > { %v942_v17 = vsel %vm319_vm5, %v941_v1, %v940_v59  ;;  %v650_v53 = vrot.slane %v1952_v12, 5  ;;  %v846_v59 = vrot.slane %v1942_v61, 1  ;;  %v853_v9 = vrot.slane %v1954_v13, 5 }
 0x293   : > { %1340 = vmatmul.mubr.msk.f32.vlgmr.msra.gmra.mrb[0].mxu1 %vm349_vm8, %v434_v54  ;;  %v944_v35 = vsel %vm322_vm6, %v943_v11, %v942_v17  ;;  %v1049_v11 = vrot.slane %v1944_v62, 1  ;;  %v851_v17 = vrot.slane %v1952_v12, 6 }
 0x294   : > { %1343 = vmatpush3.xpose.msk.msra.mxu1 %vm349_vm8, %v558_v51  ;;  %1344 = vmatprep.mubr.msk.f32.mxu1 %vm1619_vm0, %v1618_v0  ;;  %v946_v20 = vsel %vm325_vm7, %v945_v19, %v944_v35  ;;  %v645_v51 = vsel %vm307_vm1, %v1942_v61, %v644_v49  ;;  %v1052_v35 = vrot.slane %v1952_v12, 7  ;;  %v1056_v12 = vrot.slane %v1956_v14, 5 }
 0x295   : > { %1352 = vmatprep.subr.mxu1 %v1618_v0  ;;  %v647_v52 = vsel %vm310_vm2, %v646_v50, %v645_v51 }
 0x296   : > { %v649_v54 = vsel %vm313_vm3, %v648_v4, %v647_v52 }
 0x297   : > { %1345 = vmatmul.mubr.msk.f32.vlgmr.msra.gmra.mrb[2].mxu1 %vm349_vm8, %v544_v60  ;;  %v651_v56 = vsel %vm316_vm4, %v650_v53, %v649_v54  ;;  %v847_v60 = vsel %vm307_vm1, %v846_v59, %v845_v31 }
 0x298   : > { %1353 = vmatpush3.xpose.msk.msra.mxu1 %vm349_vm8, %v759_v7  ;;  %1354 = vmatprep.mubr.msk.f32.mxu1 %vm1619_vm0, %v1618_v0  ;;  %v653_v33 = vsel %vm319_vm5, %v652_v55, %v651_v56  ;;  %v1047_v7 = vrot.slane %v1942_v61, 2  ;;  %v848_v63 = vsel %vm310_vm2, %v1944_v62, %v847_v60 }
 0x299   : > { %1362 = vmatprep.subr.mxu1 %v1618_v0  ;;  %v655_v58 = vsel %vm322_vm6, %v654_v6, %v653_v33  ;;  %v850_v19 = vsel %vm313_vm3, %v849_v34, %v848_v63 }
 0x29a   : > { %v657_v1 = vsel %vm325_vm7, %v656_v57, %v655_v58  ;;  %v1048_v15 = vsel %vm307_vm1, %v1047_v7, %v1046_v2  ;;  %v852_v61 = vsel %vm316_vm4, %v851_v17, %v850_v19 }
 0x29b   : > { %1355 = vmatmul.mubr.msk.f32.vlgmr.msra.gmra.mrb[4].mxu1 %vm349_vm8, %v745_v18  ;;  %1348 = vmatpush3.msra.mxu0 %v657_v1 }
 0x29c   : > { %1363 = vmatpush3.xpose.msk.msra.mxu1 %vm349_vm8, %v960_v8  ;;  %1364 = vmatprep.mubr.msk.f32.mxu1 %vm1619_vm0, %v1618_v0  ;;  %v1050_v8 = vsel %vm310_vm2, %v1049_v11, %v1048_v15 }
 0x29d   : > { %1357 = vmatprep.subr.mxu0 %v1618_v0  ;;  %v1051_v62 = vsel %vm313_vm3, %v1949_v10, %v1050_v8 }
 0x29f   : > { %1365 = vmatmul.mubr.msk.f32.vlgmr.msra.gmra.mrb[6].mxu1 %vm349_vm8, %v946_v20 }
 0x366   : > { %v2080_v21 = vpop.f32.mrb[0].mxu1 }
 0x367   : > { %v1341_v37 = vpop.f32.mrb[1].mxu1 }
 0x368   : > { %v855_v37 = vrot.slane %v1956_v14, 4 }
 0x36a   : > { %v629_v3 = vpop.f32.mrb[2].mxu1 }
 0x36b   : > { %v1346_v22 = vpop.f32.mrb[3].mxu1  ;;  %v633_v29 = vsel %vm349_vm8, %v629_v3, -inf }
 0x36c   : > { %634 = vmax.xlane.f32.xlu1 %v633_v29  ;;  %v1054_v22 = vrot.slane %v1954_v13, 6  ;;  %v1053_v29 = vsel %vm316_vm4, %v1052_v35, %v1051_v62 }
 0x36e   : > { %v830_v23 = vpop.f32.mrb[4].mxu1 }
 0x36f   : > { %v1356_v24 = vpop.f32.mrb[5].mxu1  ;;  %v834_v25 = vsel %vm349_vm8, %v830_v23, -inf }
 0x370   : > { %835 = vmax.xlane.f32.xlu1 %v834_v25  ;;  %v857_v24 = vrot.slane %v1960_v16, 3 }
 0x372   : > { %v1031_v26 = vpop.f32.mrb[6].mxu1 }
 0x373   : > { %v1366_v27 = vpop.f32.mrb[7].mxu1  ;;  %v1035_v28 = vsel %vm349_vm8, %v1031_v26, -inf }
 0x374   : > { %1036 = vmax.xlane.f32.xlu0 %v1035_v28 }
 0x3f9   : > { %v635_v32 = vpop.xlane.xlu1 %634 }
 0x3fa   : > { %v636_v36 = vsub.f32 %v629_v3, %v635_v32  ;;  %v854_v3 = vsel %vm319_vm5, %v853_v9, %v852_v61  ;;  %v1058_v32 = vrot.slane %v1960_v16, 4 }
 0x3fb   : > { %v856_v25 = vsel %vm322_vm6, %v855_v37, %v854_v3 }
 0x3fc   : > { %v637_v38 = vmul.f32 1.442695, %v636_v36  ;;  %v858_v28 = vsel %vm325_vm7, %v857_v24, %v856_v25 }
 0x3fd   : > { %v836_v30 = vpop.xlane.xlu1 %835 }
 0x3fe   : > { %1439 = vpow2.f32 %v637_v38  ;;  %v837_v39 = vsub.f32 %v830_v23, %v836_v30 }
 0x400   : > { %v838_v40 = vmul.f32 1.442695, %v837_v39 }
 0x401   : > { %v1037_v41 = vpop.xlane.xlu0 %1036 }
 0x402   : > { %1441 = vpow2.f32 %v838_v40  ;;  %v1038_v42 = vsub.f32 %v1031_v26, %v1037_v41  ;;  %v1055_v26 = vsel %vm319_vm5, %v1054_v22, %v1053_v29 }
 0x403   : > { %v1057_v13 = vsel %vm322_vm6, %v1056_v12, %v1055_v26 }
 0x404   : > { %v1039_v43 = vmul.f32 1.442695, %v1038_v42  ;;  %v1059_v14 = vsel %vm325_vm7, %v1058_v32, %v1057_v13 }
 0x406   : > { %1443 = vpow2.f32 %v1039_v43 }
 0x408   : > { %v1440_v44 = vpop.eup %1439 }
 0x409   : > { %v639_v45 = vsel %vm349_vm8, %v1440_v44, 0.0 }
 0x40a   : > { %640 = vadd.xlane.f32.xlu1 %v639_v45 }
 0x40c   : > { %v1442_v46 = vpop.eup %1441 }
 0x40d   : > { %v840_v47 = vsel %vm349_vm8, %v1442_v46, 0.0 }
 0x40e   : > { %841 = vadd.xlane.f32.xlu0 %v840_v47 }
 0x410   : > { %v2087_v48 = vpop.eup %1443 }
 0x411   : > { %v1041_v5 = vsel %vm349_vm8, %v2087_v48, 0.0 }
 0x412   : > { %1042 = vadd.xlane.f32.xlu1 %v1041_v5 }
 0x497   : > { %v641_v18 = vpop.xlane.xlu1 %640 }
 0x498   : > { %1445 = vrcp.f32 %v641_v18 }
 0x49b   : > { %v842_v20 = vpop.xlane.xlu0 %841 }
 0x49c   : > { %1447 = vrcp.f32 %v842_v20 }
 0x49f   : > { %v1043_v23 = vpop.xlane.xlu1 %1042 }
 0x4a0   : > { %1449 = vrcp.f32 %v1043_v23 }
 0x4a2   : > { %v1446_v10 = vpop.eup %1445 }
 0x4a3   : > { %v643_v27 = vmul.f32 %v1446_v10, %v1440_v44 }
 0x4a5   : > { %1350 = vmatmul.mubr.msk.f32.vlgmr.msra.gmra.mrb[2].mxu0 %vm349_vm8, %v643_v27 }
 0x4a6   : > { %v1448_v36 = vpop.eup %1447  ;;  %1358 = vmatpush3.msra.mxu0 %v858_v28  ;;  %1359 = vmatprep.mubr.msk.f32.mxu0 %vm1619_vm0, %v1618_v0 }
 0x4a7   : > { %v844_v38 = vmul.f32 %v1448_v36, %v1442_v46  ;;  %1367 = vmatprep.subr.mxu0 %v1618_v0 }
 0x4a9   : > { %1360 = vmatmul.mubr.msk.f32.vlgmr.msra.gmra.mrb[4].mxu0 %vm349_vm8, %v844_v38 }
 0x4aa   : > { %v1450_v30 = vpop.eup %1449  ;;  %1368 = vmatpush3.msra.mxu0 %v1059_v14  ;;  %1369 = vmatprep.mubr.msk.f32.mxu0 %vm1619_vm0, %v1618_v0 }
 0x4ab   : > { %v1045_v16 = vmul.f32 %v1450_v30, %v2087_v48 }
 0x4ad   : > { %1370 = vmatmul.mubr.msk.f32.vlgmr.msra.gmra.mrb[6].mxu0 %vm349_vm8, %v1045_v16 }
 0x578   : > { %v728_v39 = vpop.f32.mrb[2].mxu0 }
 0x579   : > { %1135 = vrot.lane.b32.xlu0 %v728_v39, %s1620_s7  ;;  %v1351_v40 = vpop.f32.mrb[3].mxu0 }
 0x57c   : > { %v929_v41 = vpop.f32.mrb[4].mxu0 }
 0x57d   : > { %1139 = vrot.lane.b32.xlu1 %v929_v41, %s1621_s4  ;;  %v1361_v42 = vpop.f32.mrb[5].mxu0 }
 0x580   : > { %v1130_v43 = vpop.f32.mrb[6].mxu0 }
 0x581   : > { %1143 = vrot.lane.b32.xlu1 %v1130_v43, %s1622_s11  ;;  %v1371_v44 = vpop.f32.mrb[7].mxu0 }
 0x5eb   : > { %v1136_v0 = vpop.permute.xlu0 %1135 }
 0x5ec   : > { %v1146_v46 = vsel %vm349_vm8, %v2080_v21, %v1136_v0 }
 0x5ef   : > { %v1140_v45 = vpop.permute.xlu1 %1139 }
 0x5f0   : > { %v1148_v47 = vsel %vm1147_vm9, %v1146_v46, %v1140_v45 }
 0x5f3   : > { %v1144_v48 = vpop.permute.xlu1 %1143 }
 0x5f4   : > { %v1150_v5 = vsel %vm1149_vm10, %v1148_v47, %v1144_v48 }
 0x5f5   : > { %1152 = vst.msk [vmem:[%s265_s5] sm:$0xff] %vm1151_vm11, %v1150_v5 }
 0x5f6   : > { %1554 = shalt.err (!%p1551_p10)
}
 0x5f7   : > { %s1555_s10 = scalar_lea.hbm %s2153_s19, 128  ;;  %s1559_s17 = scalar_lea.hbm %s2200_s3, 256 }
 0x5f8   : > { %p1556_p11 = scmp.ne.s32.totalorder %s2153_s19, %s1555_s10  ;;  %p1560_p5 = scmp.lt.u32.totalorder %s2153_s19, %s2200_s3 }
 0x5f9   : > { %p1561_p2 = scmp.lt.u32.totalorder %s1559_s17, %s1555_s10  ;;  %p1563_p13 = scmp.lt.u32.totalorder %s1555_s10, %s2153_s19 }
 0x5fa   : > { %p1557_p4 = pnand %p1556_p11, %p2220_p7 }
 0x5fb   : > { %p1562_p1 = por %p1561_p2, %p1560_p5 }
 0x5fc   : > { %p1558_p3 = pneg %p1557_p4 }
 0x5fd   : > { %p1564_p6 = por %p1563_p13, %p1562_p1 }
 0x5ff   : > { %p1565_p9 = pnand %p1564_p6, %p1558_p3 }
 0x601   : > { %1568 = shalt.err (!%p1565_p9)
}
 0x602   : > { %1378 = dma.vmem_to_hbm [thread:$0]  (%p2220_p7), %s2155_s26, 128, %s2153_s19, %s1154_s16  }
 0x603 PF: > { %s1179_s4 = sand.u32 1, %s1599_s12   ;;  %p2221_p12 = scmp.ne.s32.totalorder %s2210_s24, 0 }
 0x604   : > { %p2222_p0 = scmp.ge.s32.totalorder %s1611_s15, 2  ;;  %s1180_s11 = scalar_lea.sflag [#allocation4], %s1179_s4 }
 0x606   : > { %p1391_p8 = pnand %p2222_p0, %p2221_p12 }
 0x608   : > { %1594 = dma.done.wait (!%p1391_p8), %s1180_s11, 128  }
 0x609   : > { %1596 = vsyncadd (!%p1391_p8), %s1180_s11, 4294967168  ;;  %p19_p10 = scmp.ge.s32.totalorder %s1669_s18, 4   ;;  %s2223_s12 = smov %s1603_s13 }
 0x60a   : > { %s2224_s13 = smov %s1607_s14  ;;  %s2225_s14 = smov %s1681_s21 }
 0x60b   : > { %s2226_s15 = smov %s1669_s18  ;;  %21 = sbr.rel (!%p19_p10) target bundleno = 9 (0x9), region = 101 }
 0x612   :  { %1185 = vsyncpa [#allocation3], 1 }
 0x613   :  { %1187 = vsyncpa [#allocation3 + $0x1], 1 }
 0x614   :  { %1188 = vsyncpa [#allocation6], 1 }
 0x615   :  { %1190 = vsyncpa [#allocation6 + $0x1], 1 }
 0x616   :  { %1191 = vsyncpa [#allocation4], 1 }
 0x617   :  { %1193 = vsyncpa [#allocation4 + $0x1], 1 }

</bundles_post_ra>
